<compile_context>
chip_gen: v6e
topology: v6e:2x2x1
jax: 0.10.0
libtpu: 0.0.40
codegen_flags: <defaults>
</compile_context>

<pallas_src>
import functools
import math

import numpy as np
import jax
import jax.numpy as jnp
from jax.experimental import pallas as pl
from jax.experimental.pallas import tpu as pltpu


def construct_frequencies(num_freqs: int, min_period_len: float, max_period_len: float) -> np.ndarray:
    freqs = 2 * np.pi / 2 ** np.linspace(np.log2(min_period_len), np.log2(max_period_len), num_freqs)
    freqs = freqs[::-1].copy().astype(np.float32)[None, :]  # [1, K]
    return freqs


def time_enc_kernel(t_ref, lat_ref, wa_ref, wpp_ref, freqs_ref, ps_ref, out_ref, *, K):
    lat = lat_ref[...]                                                   # [tn, D] bf16
    # Two MXU matmuls, f32 accumulation. amp comes out full-width (no slicing).
    amp = jnp.dot(lat, wa_ref[...], preferred_element_type=jnp.float32)  # [tn, 2K]
    pp = jnp.dot(lat, wpp_ref[...], preferred_element_type=jnp.float32)  # [tn, 2K] = [periods|phases]

    periods = pp[:, :K]                                                  # [tn, K]
    phases = pp[:, K:]                                                   # [tn, K]

    t = t_ref[...]                                                       # [tn, 1] f32
    # phase_scales applied post-matmul in f32 (resident [1,K]).
    raw = freqs_ref[...] * (t * (jnp.tanh(periods) + 1.0)) + ps_ref[...] * phases   # [tn, K]

    # Single full-width sin: cos(x) = sin(x + pi/2). One XLU lane-concat, one
    # [tn,2K] transcendental slab (3K transcendentals/row total incl. tanh),
    # one full-width amp multiply, one dense 128-lane store.
    angle = jnp.concatenate([raw, raw + jnp.float32(0.5 * np.pi)], axis=-1)          # [tn, 2K]
    out_ref[...] = (amp * jnp.sin(angle)).astype(out_ref.dtype)


def periodic_feats_time_encoder(t, latent, w_periods, w_phases, w_amp, freqs, phase_scales,
                                *, tn=2048, matmul_dtype=jnp.bfloat16, out_dtype=jnp.bfloat16):
    N, D = latent.shape
    K = freqs.shape[1]

    t_flat = t.reshape(-1, 1).astype(jnp.float32)                        # [N, 1]

    # --- wrapper-side weight prep (one-time transforms, not per-call compute) ---
    w_amp_m = w_amp.astype(matmul_dtype)                                 # [D, 2K]
    w_pp_m = jnp.concatenate([w_periods, w_phases], axis=1).astype(matmul_dtype)   # [D, 2K]
    lat = latent.astype(matmul_dtype)
    freqs_f = freqs.astype(jnp.float32)                                  # [1, K]
    ps_f = phase_scales.astype(jnp.float32)                              # [1, K]

    # --- row tile: large (amortize ~0.35us/grid-step), clamped for small N ---
    n_rows8 = ((N + 7) // 8) * 8
    tn_eff = min(tn, n_rows8)
    tn_eff = max(8, (tn_eff // 8) * 8)
    n_tiles = pl.cdiv(N, tn_eff)
    n_pad = n_tiles * tn_eff
    if n_pad != N:
        lat = jnp.pad(lat, ((0, n_pad - N), (0, 0)))
        t_flat = jnp.pad(t_flat, ((0, n_pad - N), (0, 0)))

    itm = jnp.dtype(matmul_dtype).itemsize
    oitm = jnp.dtype(out_dtype).itemsize
    cost = pl.CostEstimate(
        flops=2 * n_pad * D * 4 * K + 12 * n_pad * K,
        transcendentals=3 * n_pad * K,                    # tanh(K) + sin(2K) per row
        bytes_accessed=(n_pad * D * itm                   # latent
                        + 2 * D * 2 * K * itm             # resident weights
                        + n_pad * 4                       # t
                        + 2 * K * 4                       # freqs + phase_scales
                        + n_pad * 2 * K * oitm),          # bf16 output
    )

    out = pl.pallas_call(
        functools.partial(time_enc_kernel, K=K),
        out_shape=jax.ShapeDtypeStruct((n_pad, 2 * K), out_dtype),
        grid_spec=pltpu.PrefetchScalarGridSpec(
            num_scalar_prefetch=0,
            grid=(n_tiles,),
            in_specs=[
                pl.BlockSpec((tn_eff, 1), lambda i: (i, 0)),       # t (f32)
                pl.BlockSpec((tn_eff, D), lambda i: (i, 0)),       # latent (bf16)
                pl.BlockSpec((D, 2 * K), lambda i: (0, 0)),        # amp weights (resident)
                pl.BlockSpec((D, 2 * K), lambda i: (0, 0)),        # [periods|phases] weights (resident)
                pl.BlockSpec((1, K), lambda i: (0, 0)),            # freqs (resident)
                pl.BlockSpec((1, K), lambda i: (0, 0)),            # phase_scales (resident)
            ],
            out_specs=pl.BlockSpec((tn_eff, 2 * K), lambda i: (i, 0)),
        ),
        compiler_params=pltpu.CompilerParams(dimension_semantics=("parallel",)),
        cost_estimate=cost,
    )(t_flat, lat, w_amp_m, w_pp_m, freqs_f, ps_f)

    return out[:N]


def reference(t, latent, w_periods, w_phases, w_amp, freqs, phase_scales,
              matmul_dtype=jnp.bfloat16, out_dtype=jnp.bfloat16):
    # Pure-JAX reference mirroring the forward, with the same operand
    # quantization (bf16 operands, f32 accumulation) the kernel uses on the MXU
    # and the same bf16 output rounding.
    t_flat = t.reshape(-1, 1).astype(jnp.float32)
    lat = latent.astype(matmul_dtype)
    periods = jnp.dot(lat, w_periods.astype(matmul_dtype), preferred_element_type=jnp.float32)
    phases = jnp.dot(lat, w_phases.astype(matmul_dtype), preferred_element_type=jnp.float32)
    amp = jnp.dot(lat, w_amp.astype(matmul_dtype), preferred_element_type=jnp.float32)
    raw = freqs * (t_flat * (jnp.tanh(periods) + 1.0)) + phase_scales * phases
    pos = jnp.concatenate([jnp.sin(raw), jnp.cos(raw)], axis=1)
    return (amp * pos).astype(out_dtype)


if __name__ == "__main__":
    # Config (small shapes)
    batch_size = 2
    num_frames = 8
    N = batch_size * num_frames        # 16
    latent_dim = 128
    num_freqs = 64
    num_feats_per_freq = 1
    K = num_freqs * num_feats_per_freq
    min_period_len = 2.0
    max_period_len = 64.0

    # Buffers
    freqs_np = construct_frequencies(num_freqs, min_period_len, max_period_len)   # [1, K]
    freqs = jnp.asarray(freqs_np)
    # phase_scales = max_period_len / period_lens, period_lens = 2*pi / freqs
    phase_scales = jnp.asarray((max_period_len * freqs_np / (2.0 * np.pi)).astype(np.float32))  # [1, K]

    # Deterministic parameter init (FullyConnectedLayer: randn([out, in]), gain = 1/sqrt(in))
    key = jax.random.PRNGKey(0)
    k_t, k_lat, k_wp, k_wph, k_wa = jax.random.split(key, 5)
    gain = 1.0 / math.sqrt(latent_dim)
    # pre-scale by gain and transpose to [in, out] (wrapper glue)
    w_periods = (jax.random.normal(k_wp, (K, latent_dim), jnp.float32) * gain).T            # [D, K]
    w_phases = (jax.random.normal(k_wph, (K, latent_dim), jnp.float32) * gain).T            # [D, K]
    w_amp = (jax.random.normal(k_wa, (2 * K, latent_dim), jnp.float32) * gain).T            # [D, 2K]

    # Inputs
    t = jax.random.uniform(k_t, (batch_size, num_frames), jnp.float32, 0.0, max_period_len)
    latent = jax.random.normal(k_lat, (N, latent_dim), jnp.float32)

    out = periodic_feats_time_encoder(t, latent, w_periods, w_phases, w_amp, freqs, phase_scales,
                                      tn=2048, matmul_dtype=jnp.bfloat16, out_dtype=jnp.bfloat16)
    out = jax.block_until_ready(out)

    ref = jax.block_until_ready(
        reference(t, latent, w_periods, w_phases, w_amp, freqs, phase_scales,
                  matmul_dtype=jnp.bfloat16, out_dtype=jnp.bfloat16))
    assert out.shape == (N, 2 * K) and out.dtype == jnp.bfloat16
    # bf16 MXU operands (f32 accumulation) + bf16 output on both paths; tolerance
    # loosened vs an all-f32 comparison because high-frequency features amplify
    # tiny matmul rounding / accumulation-order differences.
    np.testing.assert_allclose(np.asarray(out, dtype=np.float32),
                               np.asarray(ref, dtype=np.float32),
                               rtol=2e-2, atol=2e-2)

    print("KERNEL_OK")
</pallas_src>

<mosaic_0001>
module attributes {stable_mosaic.version = 11 : i64} {
  func.func @time_enc_kernel(%arg0: i32, %arg1: memref<16x1xf32, #tpu.memory_space<vmem>>, %arg2: memref<16x128xbf16, #tpu.memory_space<vmem>>, %arg3: memref<128x128xbf16, #tpu.memory_space<vmem>>, %arg4: memref<128x128xbf16, #tpu.memory_space<vmem>>, %arg5: memref<1x64xf32, #tpu.memory_space<vmem>>, %arg6: memref<1x64xf32, #tpu.memory_space<vmem>>, %arg7: memref<16x128xbf16, #tpu.memory_space<vmem>>) attributes {dimension_semantics = [#tpu.dimension_semantics<parallel>], iteration_bounds = array<i64: 1>, scalar_prefetch = 0 : i64, scratch_operands = 0 : i64, tpu.core_type = #tpu.core_type<tc>, window_params = [{transform_indices = @transform_0, window_bounds = array<i64: 16, 1>}, {transform_indices = @transform_1, window_bounds = array<i64: 16, 128>}, {pipeline_mode = #tpu.pipeline_mode<synchronous>, transform_indices = @transform_2, window_bounds = array<i64: 128, 128>}, {pipeline_mode = #tpu.pipeline_mode<synchronous>, transform_indices = @transform_3, window_bounds = array<i64: 128, 128>}, {pipeline_mode = #tpu.pipeline_mode<synchronous>, transform_indices = @transform_4, window_bounds = array<i64: 1, 64>}, {pipeline_mode = #tpu.pipeline_mode<synchronous>, transform_indices = @transform_5, window_bounds = array<i64: 1, 64>}, {transform_indices = @transform_6, window_bounds = array<i64: 16, 128>}]} {
    %c0 = arith.constant 0 : index
    %c0_0 = arith.constant 0 : index
    %0 = vector.load %arg2[%c0, %c0_0] : memref<16x128xbf16, #tpu.memory_space<vmem>>, vector<16x128xbf16>
    %c0_1 = arith.constant 0 : index
    %c0_2 = arith.constant 0 : index
    %1 = vector.load %arg3[%c0_1, %c0_2] : memref<128x128xbf16, #tpu.memory_space<vmem>>, vector<128x128xbf16>
    %cst = arith.constant dense<0.000000e+00> : vector<16x128xf32>
    %2 = tpu.matmul %0, %1, %cst {dimension_numbers = #tpu.dot_dimension_numbers<[1], [0], [0], [1], [0, 0, 1, 1], [], []>} : vector<16x128xbf16>, vector<128x128xbf16>, vector<16x128xf32> -> vector<16x128xf32>
    %c0_3 = arith.constant 0 : index
    %c0_4 = arith.constant 0 : index
    %3 = vector.load %arg4[%c0_3, %c0_4] : memref<128x128xbf16, #tpu.memory_space<vmem>>, vector<128x128xbf16>
    %cst_5 = arith.constant dense<0.000000e+00> : vector<16x128xf32>
    %4 = tpu.matmul %0, %3, %cst_5 {dimension_numbers = #tpu.dot_dimension_numbers<[1], [0], [0], [1], [0, 0, 1, 1], [], []>} : vector<16x128xbf16>, vector<128x128xbf16>, vector<16x128xf32> -> vector<16x128xf32>
    %5 = vector.extract_strided_slice %4 {offsets = [0, 0], sizes = [16, 64], strides = [1, 1]} : vector<16x128xf32> to vector<16x64xf32>
    %6 = vector.extract_strided_slice %4 {offsets = [0, 64], sizes = [16, 64], strides = [1, 1]} : vector<16x128xf32> to vector<16x64xf32>
    %c0_6 = arith.constant 0 : index
    %c0_7 = arith.constant 0 : index
    %7 = vector.load %arg1[%c0_6, %c0_7] : memref<16x1xf32, #tpu.memory_space<vmem>>, vector<16x1xf32>
    %c0_8 = arith.constant 0 : index
    %c0_9 = arith.constant 0 : index
    %8 = vector.load %arg5[%c0_8, %c0_9] : memref<1x64xf32, #tpu.memory_space<vmem>>, vector<1x64xf32>
    %9 = math.tanh %5 : vector<16x64xf32>
    %cst_10 = arith.constant 1.000000e+00 : f32
    %10 = vector.broadcast %cst_10 : f32 to vector<16x64xf32>
    %11 = arith.addf %9, %10 : vector<16x64xf32>
    %12 = vector.broadcast %7 : vector<16x1xf32> to vector<16x64xf32>
    %13 = arith.mulf %12, %11 : vector<16x64xf32>
    %14 = vector.broadcast %8 : vector<1x64xf32> to vector<16x64xf32>
    %15 = arith.mulf %14, %13 : vector<16x64xf32>
    %c0_11 = arith.constant 0 : index
    %c0_12 = arith.constant 0 : index
    %16 = vector.load %arg6[%c0_11, %c0_12] : memref<1x64xf32, #tpu.memory_space<vmem>>, vector<1x64xf32>
    %17 = vector.broadcast %16 : vector<1x64xf32> to vector<16x64xf32>
    %18 = arith.mulf %17, %6 : vector<16x64xf32>
    %19 = arith.addf %15, %18 : vector<16x64xf32>
    %cst_13 = arith.constant 1.57079637 : f32
    %20 = vector.broadcast %cst_13 : f32 to vector<16x64xf32>
    %21 = arith.addf %19, %20 : vector<16x64xf32>
    %22 = tpu.concatenate %19, %21 in 1 : vector<16x64xf32>, vector<16x64xf32> -> vector<16x128xf32>
    %23 = math.sin %22 : vector<16x128xf32>
    %24 = arith.mulf %2, %23 : vector<16x128xf32>
    %25 = arith.truncf %24 : vector<16x128xf32> to vector<16x128xbf16>
    %c0_14 = arith.constant 0 : index
    %c0_15 = arith.constant 0 : index
    %26 = vector.load %arg7[%c0_14, %c0_15] : memref<16x128xbf16, #tpu.memory_space<vmem>>, vector<16x128xbf16>
    tpu.vector_store %arg7[%c0_14, %c0_15], %25 {strides = array<i32>} : memref<16x128xbf16, #tpu.memory_space<vmem>>, vector<16x128xbf16>,
    return
  }
  func.func @transform_0(%arg0: i32) -> (i32, i32) {
    %c0_i32 = arith.constant 0 : i32
    %c0_i32_0 = arith.constant 0 : i32
    return %arg0, %c0_i32 : i32, i32
  }
  func.func @transform_1(%arg0: i32) -> (i32, i32) {
    %c0_i32 = arith.constant 0 : i32
    %c0_i32_0 = arith.constant 0 : i32
    return %arg0, %c0_i32 : i32, i32
  }
  func.func @transform_2(%arg0: i32) -> (i32, i32) {
    %c0_i32 = arith.constant 0 : i32
    %c0_i32_0 = arith.constant 0 : i32
    %c0_i32_1 = arith.constant 0 : i32
    return %c0_i32, %c0_i32_0 : i32, i32
  }
  func.func @transform_3(%arg0: i32) -> (i32, i32) {
    %c0_i32 = arith.constant 0 : i32
    %c0_i32_0 = arith.constant 0 : i32
    %c0_i32_1 = arith.constant 0 : i32
    return %c0_i32, %c0_i32_0 : i32, i32
  }
  func.func @transform_4(%arg0: i32) -> (i32, i32) {
    %c0_i32 = arith.constant 0 : i32
    %c0_i32_0 = arith.constant 0 : i32
    %c0_i32_1 = arith.constant 0 : i32
    return %c0_i32, %c0_i32_0 : i32, i32
  }
  func.func @transform_5(%arg0: i32) -> (i32, i32) {
    %c0_i32 = arith.constant 0 : i32
    %c0_i32_0 = arith.constant 0 : i32
    %c0_i32_1 = arith.constant 0 : i32
    return %c0_i32, %c0_i32_0 : i32, i32
  }
  func.func @transform_6(%arg0: i32) -> (i32, i32) {
    %c0_i32 = arith.constant 0 : i32
    %c0_i32_0 = arith.constant 0 : i32
    return %arg0, %c0_i32 : i32, i32
  }
}

</mosaic_0001>

<bundles_post_ra>
// kernel: tpu_custom_call.1
= control target key start
LH: loop header
LB: loop body
LE: loop exit
PB: predicated region body
PF: predicated region fallthrough
CT: control target
= control target key end

     0   :  { %11 = vsyncpa [#allocation3], 0  ;;  %s949_s0 = inlined_call_operand.vmem [shape: f32[16,1], index: 0, kind: input, shape index: {}]   ;;  %s950_s1 = inlined_call_operand.vmem [shape: bf16[16,128], index: 1, kind: input, shape index: {}]   ;;  %s951_s2 = inlined_call_operand.hbm [shape: bf16[128,128], index: 2, kind: input, shape index: {}]   ;;  %s952_s3 = inlined_call_operand.hbm [shape: bf16[128,128], index: 3, kind: input, shape index: {}]   ;;  %s953_s4 = inlined_call_operand.vmem [shape: f32[1,64], index: 4, kind: input, shape index: {}]   ;;  %s954_s5 = inlined_call_operand.vmem [shape: f32[1,64], index: 5, kind: input, shape index: {}]   ;;  %s955_s6 = inlined_call_operand.hbm [shape: bf16[16,128], index: 6, kind: output, shape index: {}]  }
   0x1   :  { %12 = vsyncpa [#allocation6], 0 }
   0x2   :  { %13 = vsyncpa [#allocation4], 0  ;;  %s780_s21 = smov [#allocation2]  }
   0x3   :  { %s23_s22 = sshll.u32 %s780_s21, 4  ;;  %s24_s22 = int_to_ptr.vmem [resolvable:$true] %s23_s22 }
   0x4   :  { %s722_s23 = scalar_lea.vmem %s24_s22, 1024  ;;  %p727_p1 = scmp.lt.s32.totalorder %s24_s22, %s24_s22 }
   0x5   :  { %p723_p0 = scmp.ne.s32.totalorder %s24_s22, %s722_s23  ;;  %p728_p2 = scmp.lt.s32.totalorder %s722_s23, %s722_s23 }
   0x7   :  { %p729_p3 = por %p728_p2, %p727_p1 }
   0x9   :  { %p730_p4 = pnand %p729_p3, %p723_p0 }
   0xb   :  { %733 = shalt.err (!%p730_p4)
}
   0xc   :  { %s781_s24 = smov 64   ;;  %s782_s25 = smov 4  }
   0xd   :  { %29 = dma.hbm_to_vmem [thread:$0]  %s951_s2, 1024, %s24_s22, [#allocation3], %s781_s24, %s781_s24, %s782_s25  }
   0xe   :  { %s783_s28 = smov [#allocation5]  }
   0xf   :  { %s35_s29 = sshll.u32 %s783_s28, 4  ;;  %s36_s29 = int_to_ptr.vmem [resolvable:$true] %s35_s29 }
  0x10   :  { %s742_s30 = scalar_lea.vmem %s36_s29, 1024  ;;  %p747_p6 = scmp.lt.s32.totalorder %s36_s29, %s36_s29 }
  0x11   :  { %p743_p5 = scmp.ne.s32.totalorder %s36_s29, %s742_s30  ;;  %p748_p7 = scmp.lt.s32.totalorder %s742_s30, %s742_s30 }
  0x13   :  { %p749_p8 = por %p748_p7, %p747_p6 }
  0x15   :  { %p750_p9 = pnand %p749_p8, %p743_p5 }
  0x17   :  { %753 = shalt.err (!%p750_p9)
}
  0x18   :  { %41 = dma.hbm_to_vmem [thread:$0]  %s952_s3, 1024, %s36_s29, [#allocation6], %s781_s24, %s781_s24, %s782_s25  }
  0x19   :  { %774 = dma.done.wait [#allocation3], 1024  }
  0x1a   :  { %775 = vsyncadd [#allocation3], 4294966272 }
  0x1b   :  { %776 = dma.done.wait [#allocation6], 1024  }
  0x1c   :  { %777 = vsyncadd [#allocation6], 4294966272  ;;  %v784_v0 = vmov 0.0   ;;  %vm785_vm0 = vmmov 0   ;;  %v786_v1 = vmov 0   ;;  %v685_v2 = vld [vmem:[#allocation5 + $0x38] sm:$0xff]  }
  0x1d   :  { %642 = vmatprep.subr.bf16.mxu1 %v784_v0  ;;  %658 = vmatprep.mubr.msk.bf16.mxu1 %vm785_vm0, %v784_v0  ;;  %v686_v3 = vld [vmem:[#allocation5 + $0x30] sm:$0xff]   ;;  %v687_v4 = vld [vmem:[#allocation5 + $0x28] sm:$0xff]   ;;  %v688_v5 = vld [vmem:[#allocation5 + $0x20] sm:$0xff]   ;;  %vm327_vm1 = vcmask 523264  }
  0x1e   :  { %684 = vset.pattern.permute.xlu0 %v786_v1  ;;  %622 = vmatprep.subr.bf16.mxu0 %v784_v0  ;;  %v271_v6 = vld [vmem:[%s949_s0] sm:$0xff]  ;;  %v272_v7 = vld [vmem:[%s949_s0 + $0x8] sm:$0xff]  ;;  %v689_v8 = vld [vmem:[#allocation5 + $0x18] sm:$0xff]  }
  0x1f   :  { %638 = vmatprep.mubr.msk.bf16.mxu0 %vm785_vm0, %v784_v0  ;;  %643 = vmatpush3.bf16.msra.mxu1 %v685_v2  ;;  %v690_v9 = vld [vmem:[#allocation5 + $0x10] sm:$0xff]   ;;  %v691_v10 = vld [vmem:[#allocation5 + $0x8] sm:$0xff]   ;;  %v692_v11 = vld [vmem:[#allocation5] sm:$0xff]  }
  0x20   :  { %644 = vmatprep.subr.bf16.mxu1 %v784_v0  ;;  %280 = vperm.xlu0 %684, %v271_v6   ;;  %v693_v12 = vld [vmem:[%s950_s1] sm:$0xff]   ;;  %v694_v13 = vld [vmem:[#allocation2 + $0x38] sm:$0xff]   ;;  %v695_v14 = vld [vmem:[#allocation2 + $0x30] sm:$0xff]  }
  0x21   :  { %623 = vmatpush3.bf16.msra.mxu0 %v694_v13  ;;  %v696_v15 = vld [vmem:[#allocation2 + $0x28] sm:$0xff]   ;;  %v697_v16 = vld [vmem:[#allocation2 + $0x20] sm:$0xff]   ;;  %v698_v17 = vld [vmem:[#allocation2 + $0x18] sm:$0xff]   ;;  %v790_v13 = vmov 2102212464  }
  0x22   :  { %624 = vmatprep.subr.bf16.mxu0 %v784_v0  ;;  %v699_v18 = vld [vmem:[#allocation2 + $0x10] sm:$0xff]   ;;  %v700_v19 = vld [vmem:[#allocation2 + $0x8] sm:$0xff]   ;;  %v701_v20 = vld [vmem:[#allocation2] sm:$0xff]  }
  0x23   :  { %645 = vmatpush3.bf16.msra.mxu1 %v686_v3  ;;  %v585_v31 = vld [vmem:[%s953_s4] ss:$0 sm:$0xff]  ;;  %s793_s4 = smov [#allocation7]  }
  0x24   :  { %646 = vmatprep.subr.bf16.mxu1 %v784_v0  ;;  %285 = vperm.xlu0 %684, %v272_v7   ;;  %v586_v33 = vld [vmem:[%s954_s5] ss:$0 sm:$0xff]  ;;  %s555_s5 = sshll.u32 %s793_s4, 4  ;;  %s556_s5 = int_to_ptr.vmem [resolvable:$true] %s555_s5 }
  0x25   :  { %625 = vmatpush3.bf16.msra.mxu0 %v695_v14  ;;  %s754_s15 = scalar_lea.vmem %s556_s5, 128  ;;  %p759_p11 = scmp.lt.s32.totalorder %s556_s5, %s556_s5 }
  0x26   :  { %626 = vmatprep.subr.bf16.mxu0 %v784_v0  ;;  %p755_p10 = scmp.ne.s32.totalorder %s556_s5, %s754_s15  ;;  %p760_p12 = scmp.lt.s32.totalorder %s754_s15, %s754_s15 }
  0x27   :  { %647 = vmatpush3.bf16.msra.mxu1 %v687_v4 }
  0x28   :  { %648 = vmatprep.subr.bf16.mxu1 %v784_v0  ;;  %p761_p13 = por %p760_p12, %p759_p11 }
  0x29   :  { %627 = vmatpush3.bf16.msra.mxu0 %v696_v15  ;;  %v791_v15 = vmov 920167782  }
  0x2a   :  { %628 = vmatprep.subr.bf16.mxu0 %v784_v0  ;;  %p762_p0 = pnand %p761_p13, %p755_p10 }
  0x2b   :  { %649 = vmatpush3.bf16.msra.mxu1 %v688_v5  ;;  %v787_v5 = vmov 683565275  }
  0x2c   :  { %650 = vmatprep.subr.bf16.mxu1 %v784_v0 }
  0x2d   :  { %629 = vmatpush3.bf16.msra.mxu0 %v697_v16 }
  0x2e   :  { %630 = vmatprep.subr.bf16.mxu0 %v784_v0 }
  0x2f   :  { %651 = vmatpush3.bf16.msra.mxu1 %v689_v8 }
  0x30   :  { %652 = vmatprep.subr.bf16.mxu1 %v784_v0 }
  0x31   :  { %631 = vmatpush3.bf16.msra.mxu0 %v698_v17 }
  0x32   :  { %632 = vmatprep.subr.bf16.mxu0 %v784_v0 }
  0x33   :  { %653 = vmatpush3.bf16.msra.mxu1 %v690_v9  ;;  %v788_v9 = vmov 2475754826  }
  0x34   :  { %654 = vmatprep.subr.bf16.mxu1 %v784_v0 }
  0x35   :  { %633 = vmatpush3.bf16.msra.mxu0 %v699_v18 }
  0x36   :  { %634 = vmatprep.subr.bf16.mxu0 %v784_v0 }
  0x37   :  { %655 = vmatpush3.bf16.msra.mxu1 %v691_v10 }
  0x38   :  { %656 = vmatprep.subr.bf16.mxu1 %v784_v0 }
  0x39   :  { %635 = vmatpush3.bf16.msra.mxu0 %v700_v19 }
  0x3a   :  { %636 = vmatprep.subr.bf16.mxu0 %v784_v0 }
  0x3b   :  { %657 = vmatpush3.bf16.msra.mxu1 %v692_v11  ;;  %v789_v11 = vmov 2131351028  }
  0x3d   :  { %637 = vmatpush3.bf16.msra.mxu0 %v701_v20 }
  0x3e   :  { %659 = vmatmul.mubr.bf16.vlgmr.msra.gmra.mxu1 %v693_v12 }
  0x40   :  { %639 = vmatmul.mubr.bf16.vlgmr.msra.gmra.mxu0 %v693_v12 }
  0x9b   :  { %v281_v26 = vpop.permute.xlu0 %280 }
  0x9f   :  { %v286_v32 = vpop.permute.xlu0 %285 }
  0xfe   :  { %v264_v21 = vpop.f32.mrf.mxu1 }
  0xff   :  { %307 = vrot.lane.b32.xlu1 %v264_v21, %s781_s24  ;;  %702 = vtanh.f32 %v264_v21 }
 0x100   :  { %v660_v22 = vpop.f32.mrf.mxu1  ;;  %v860_v45 = vpop.f32.mrf.mxu0 }
 0x101   :  { %v792_v22 = vmov 1326507024  }
 0x102   :  { %v267_v23 = vpop.f32.mrf.mxu1  ;;  %v640_v46 = vpop.f32.mrf.mxu0 }
 0x103   :  { %309 = vrot.lane.b32.xlu1 %v267_v23, %s781_s24  ;;  %704 = vtanh.f32 %v267_v23 }
 0x104   :  { %v661_v24 = vpop.f32.mrf.mxu1  ;;  %v862_v47 = vpop.f32.mrf.mxu0 }
 0x106   :  { %v641_v48 = vpop.f32.mrf.mxu0 }
 0x10c   :  { %v703_v25 = vpop.eup %702 }
 0x10d   :  { %v276_v27 = vadd.f32 1.0, %v703_v25 }
 0x10f   :  { %v288_v29 = vmul.f32 %v281_v26, %v276_v27 }
 0x110   :  { %v705_v28 = vpop.eup %704 }
 0x111   :  { %v277_v30 = vadd.f32 1.0, %v705_v28  ;;  %v296_v35 = vmul.f32 %v585_v31, %v288_v29 }
 0x113   :  { %v289_v36 = vmul.f32 %v286_v32, %v277_v30 }
 0x115   :  { %v297_v40 = vmul.f32 %v585_v31, %v289_v36 }
 0x171   :  { %v308_v34 = vpop.permute.xlu1 %307 }
 0x172   :  { %v313_v37 = vmul.f32 %v586_v33, %v308_v34 }
 0x174   :  { %v315_v38 = vadd.f32 %v313_v37, %v296_v35 }
 0x175   :  { %v310_v39 = vpop.permute.xlu1 %309 }
 0x176   :  { %v314_v41 = vmul.f32 %v586_v33, %v310_v39  ;;  %v317_v42 = vadd.f32 1.5707964, %v315_v38 }
 0x178   :  { %v316_v43 = vadd.f32 %v314_v41, %v297_v40  ;;  %321 = vrot.lane.b32.xlu0 %v317_v42, %s781_s24 }
 0x17a   :  { %v318_v44 = vadd.f32 1.5707964, %v316_v43 }
 0x17c   :  { %323 = vrot.lane.b32.xlu1 %v318_v44, %s781_s24 }
 0x1ea   :  { %v322_v49 = vpop.permute.xlu0 %321 }
 0x1eb   :  { %v864_v50 = vsel %vm327_vm1, %v315_v38, %v322_v49 }
 0x1ec   :  { %v330_v51 = vand.u32 2147483647, %v864_v50  ;;  %v333_v52 = vand.u32 2139095040, %v864_v50  ;;  %vm332_vm0 = vcmp.lt.s32.totalorder %v864_v50, 0 }
 0x1ee   :  { %v334_v53 = vshrl.u32 %v333_v52, 23  ;;  %v324_v54 = vpop.permute.xlu1 %323  ;;  %v337_v55 = vand.u32 8388607, %v330_v51 }
 0x1ef   :  { %v870_v56 = vsel %vm327_vm1, %v316_v43, %v324_v54  ;;  %vm920_vm1 = vcmp.le.f32.partialorder %v330_v51, 0.7853982 }
 0x1f0   :  { %v587_v57 = vadd.s32 4294967169, %v334_v53  ;;  %v437_v58 = vand.u32 2139095040, %v870_v56  ;;  %v338_v60 = vor.u32 8388608, %v337_v55  ;;  %v434_v62 = vand.u32 2147483647, %v870_v56 }
 0x1f2   :  { %v340_v59 = vadd.s32 1, %v587_v57  ;;  %v438_v61 = vshrl.u32 %v437_v58, 23  ;;  %v874_v3 = vshll.u32 %v338_v60, 8  ;;  %v441_v7 = vand.u32 8388607, %v434_v62 }
 0x1f4   :  { %vm341_vm2 = vcmp.gt.s32.totalorder %v340_v59, 0  ;;  %v591_v0 = vadd.s32 4294967169, %v438_v61  ;;  %v442_v37 = vor.u32 8388608, %v441_v7 }
 0x1f5   :  { %v342_v63 = vsel %vm341_vm2, %v340_v59, 0  ;;  %vm436_vm2 = vcmp.lt.s32.totalorder %v870_v56, 0 }
 0x1f6   :  { %v343_v1 = vshrl.u32 %v342_v63, 5  ;;  %v344_v2 = vand.u32 31, %v342_v63  ;;  %v444_v8 = vadd.s32 1, %v591_v0  ;;  %v482_v54 = vshll.u32 %v442_v37, 8 }
 0x1f8   :  { %v345_v4 = vsub.s32 32, %v344_v2  ;;  %v347_v6 = vshll.u32 %v787_v5, %v344_v2  ;;  %v350_v10 = vshll.u32 %v788_v9, %v344_v2  ;;  %v353_v12 = vshll.u32 %v789_v11, %v344_v2 }
 0x1f9   :  { %v356_v14 = vshll.u32 %v790_v13, %v344_v2  ;;  %v359_v16 = vshll.u32 %v791_v15, %v344_v2  ;;  %vm362_vm3 = vcmp.lt.s32.totalorder %v343_v1, 1  ;;  %vm364_vm4 = vcmp.lt.s32.totalorder %v343_v1, 3 }
 0x1fa   :  { %v348_v17 = vshrl.u32 %v788_v9, %v345_v4  ;;  %v351_v18 = vshrl.u32 %v789_v11, %v345_v4  ;;  %v354_v19 = vshrl.u32 %v790_v13, %v345_v4  ;;  %v346_v20 = vshrl.u32 %v787_v5, %v345_v4 }
 0x1fb   :  { %v357_v21 = vshrl.u32 %v791_v15, %v345_v4  ;;  %v360_v23 = vshrl.u32 %v792_v22, %v345_v4  ;;  %vm445_vm5 = vcmp.gt.s32.totalorder %v444_v8, 0  ;;  %vm365_vm6 = vcmp.lt.s32.totalorder %v343_v1, 4 }
 0x1fc   :  { %v349_v24 = vor.u32 %v348_v17, %v347_v6  ;;  %v352_v25 = vor.u32 %v351_v18, %v350_v10  ;;  %v355_v26 = vor.u32 %v354_v19, %v353_v12  ;;  %v446_v29 = vsel %vm445_vm5, %v444_v8, 0 }
 0x1fd   :  { %v358_v27 = vor.u32 %v357_v21, %v356_v14  ;;  %v361_v28 = vor.u32 %v360_v23, %v359_v16  ;;  %vm363_vm7 = vcmp.lt.s32.totalorder %v343_v1, 2  ;;  %v448_v40 = vand.u32 31, %v446_v29 }
 0x1fe   :  { %v366_v30 = vsel %vm362_vm3, %v346_v20, %v349_v24  ;;  %v367_v31 = vsel %vm365_vm6, %v355_v26, 2102212464  ;;  %v370_v32 = vsel %vm362_vm3, %v349_v24, %v352_v25  ;;  %v374_v33 = vsel %vm362_vm3, %v352_v25, %v355_v26 }
 0x1ff   :  { %v368_v34 = vsel %vm364_vm4, %v352_v25, %v367_v31  ;;  %v371_v35 = vsel %vm365_vm6, %v358_v27, 920167782  ;;  %v375_v36 = vsel %vm365_vm6, %v361_v28, 1326507024  ;;  %v447_v52 = vshrl.u32 %v446_v29, 5 }
 0x200   :  { %v372_v38 = vsel %vm364_vm4, %v355_v26, %v371_v35  ;;  %v376_v39 = vsel %vm364_vm4, %v358_v27, %v375_v36  ;;  %v369_v41 = vsel %vm363_vm7, %v366_v30, %v368_v34  ;;  %v449_v53 = vsub.s32 32, %v448_v40 }
 0x201   :  { %v373_v42 = vsel %vm363_vm7, %v370_v32, %v372_v38  ;;  %v377_v43 = vsel %vm363_vm7, %v374_v33, %v376_v39  ;;  %v385_v55 = vmul.u32 %v874_v3, %v369_v41  ;;  %v451_v57 = vshll.u32 %v787_v5, %v448_v40 }
 0x202   :  { %v887_v44 = vmul.u32.u64.low %v874_v3, %v377_v43  ;;  %v888_v46 = vmul.u32.u64.high %v874_v3, %v377_v43, %v887_v44  ;;  %v891_v48 = vmul.u32.u64.low %v874_v3, %v373_v42  ;;  %v892_v49 = vmul.u32.u64.high %v874_v3, %v373_v42, %v891_v48 }
 0x203   :  { %v454_v58 = vshll.u32 %v788_v9, %v448_v40  ;;  %v457_v59 = vshll.u32 %v789_v11, %v448_v40  ;;  %v452_v60 = vshrl.u32 %v788_v9, %v449_v53  ;;  %v455_v61 = vshrl.u32 %v789_v11, %v449_v53 }
 0x204   :  { %v458_v63 = vshrl.u32 %v790_v13, %v449_v53  ;;  %v460_v0 = vshll.u32 %v790_v13, %v448_v40  ;;  %vm387_vm8 = vc.u32 %v888_v46, %v891_v48  ;;  %v388_v1 = vadd.s32 1, %v892_v49 }
 0x205   :  { %v461_v2 = vshrl.u32 %v791_v15, %v449_v53  ;;  %v463_v4 = vshll.u32 %v791_v15, %v448_v40  ;;  %v453_v6 = vor.u32 %v452_v60, %v451_v57  ;;  %v456_v7 = vor.u32 %v455_v61, %v454_v58 }
 0x206   :  { %v459_v8 = vor.u32 %v458_v63, %v457_v59  ;;  %v464_v10 = vshrl.u32 %v792_v22, %v449_v53  ;;  %v389_v3 = vsel %vm387_vm8, %v388_v1, %v892_v49  ;;  %vm466_vm9 = vcmp.lt.s32.totalorder %v447_v52, 1 }
 0x207   :  { %v462_v12 = vor.u32 %v461_v2, %v460_v0  ;;  %vm469_vm10 = vcmp.lt.s32.totalorder %v447_v52, 4  ;;  %v390_v9 = vadd.s32 %v389_v3, %v385_v55  ;;  %vm468_vm11 = vcmp.lt.s32.totalorder %v447_v52, 3 }
 0x208   :  { %v465_v11 = vor.u32 %v464_v10, %v463_v4  ;;  %v471_v13 = vsel %vm469_vm10, %v459_v8, 2102212464  ;;  %v450_v14 = vshrl.u32 %v787_v5, %v449_v53  ;;  %v474_v16 = vsel %vm466_vm9, %v453_v6, %v456_v7 }
 0x209   :  { %v475_v17 = vsel %vm469_vm10, %v462_v12, 920167782  ;;  %v478_v18 = vsel %vm466_vm9, %v456_v7, %v459_v8  ;;  %v391_v19 = vadd.s32 536870912, %v390_v9  ;;  %vm467_vm12 = vcmp.lt.s32.totalorder %v447_v52, 2 }
 0x20a   :  { %v476_v15 = vsel %vm468_vm11, %v459_v8, %v475_v17  ;;  %v479_v20 = vsel %vm469_vm10, %v465_v11, 1326507024  ;;  %v470_v21 = vsel %vm466_vm9, %v450_v14, %v453_v6  ;;  %v472_v22 = vsel %vm468_vm11, %v456_v7, %v471_v13 }
 0x20b   :  { %v477_v23 = vsel %vm467_vm12, %v474_v16, %v476_v15  ;;  %v480_v24 = vsel %vm468_vm11, %v462_v12, %v479_v20  ;;  %v902_v25 = vshrl.u32 %v391_v19, 30  ;;  %v473_v31 = vsel %vm467_vm12, %v470_v21, %v472_v22 }
 0x20c   :  { %v481_v26 = vsel %vm467_vm12, %v478_v18, %v480_v24  ;;  %v904_v27 = vmul.u32.u64.low %v482_v54, %v477_v23  ;;  %v905_v28 = vmul.u32.u64.high %v482_v54, %v477_v23, %v904_v27  ;;  %v489_v34 = vmul.u32 %v482_v54, %v473_v31 }
 0x20d   :  { %v907_v29 = vmul.u32.u64.low %v482_v54, %v481_v26  ;;  %v908_v30 = vmul.u32.u64.high %v482_v54, %v481_v26, %v907_v29  ;;  %v393_v5 = vshll.u32 %v902_v25, 30  ;;  %v386_v52 = vadd.s32 %v891_v48, %v888_v46 }
 0x20e   :  { %v492_v33 = vadd.s32 1, %v905_v28  ;;  %v416_v15 = vsub.s32 4, %v902_v25  ;;  %vm435_vm3 = vcmp.le.f32.partialorder %v434_v62, 0.7853982  ;;  %vm422_vm8 = vweird.f32 %v864_v50 }
 0x20f   :  { %v394_v32 = vsub.s32 %v390_v9, %v393_v5  ;;  %vm491_vm13 = vc.u32 %v908_v30, %v904_v27  ;;  %v490_v10 = vadd.s32 %v904_v27, %v908_v30  ;;  %vm526_vm11 = vweird.f32 %v870_v56 }
 0x210   :  { %v493_v36 = vsel %vm491_vm13, %v492_v33, %v905_v28  ;;  %v417_v22 = vsel %vm332_vm0, %v416_v15, %v902_v25 }
 0x211   :  { %v396_v35 = vsub.s32 0, %v394_v32  ;;  %v494_v37 = vadd.s32 %v493_v36, %v489_v34  ;;  %v419_v28 = vsel %vm920_vm1, 0, %v417_v22 }
 0x212   :  { %v423_v30 = vadd.s32 3, %v419_v28 }
 0x213   :  { %v588_v38 = vmin.u32 %v396_v35, %v394_v32  ;;  %v495_v39 = vadd.s32 536870912, %v494_v37 }
 0x215   :  { %v398_v40 = vclz %v588_v38  ;;  %v496_v41 = vshrl.u32 %v495_v39, 30 }
 0x217   :  { %v589_v42 = vadd.s32 4294967294, %v398_v40  ;;  %v497_v43 = vshll.u32 %v496_v41, 30  ;;  %v520_v24 = vsub.s32 4, %v496_v41 }
 0x219   :  { %vm590_vm14 = vcmp.lt.s32.totalorder %v589_v42, 0  ;;  %v498_v49 = vsub.s32 %v494_v37, %v497_v43  ;;  %v521_v29 = vsel %vm436_vm2, %v520_v24, %v496_v41 }
 0x21a   :  { %v401_v44 = vsel %vm590_vm14, 0, %v589_v42  ;;  %v523_v25 = vsel %vm435_vm3, 0, %v521_v29 }
 0x21b   :  { %v402_v53 = vsub.s32 32, %v401_v44  ;;  %v406_v54 = vsub.s32 4294967266, %v401_v44  ;;  %v500_v55 = vsub.s32 0, %v498_v49  ;;  %v403_v57 = vshll.u32 %v394_v32, %v401_v44 }
 0x21c   :  { %v424_v32 = vand.u32 3, %v423_v30  ;;  %v527_v35 = vadd.s32 3, %v523_v25 }
 0x21d   :  { %v404_v58 = vshrl.u32 %v386_v52, %v402_v53  ;;  %v407_v59 = vadd.s32 127, %v406_v54  ;;  %v592_v60 = vmin.u32 %v500_v55, %v498_v49 }
 0x21e   :  { %vm426_vm4 = vcmp.eq.s32.totalorder %v424_v32, 0  ;;  %vm429_vm5 = vcmp.eq.s32.totalorder %v424_v32, 2  ;;  %v528_v37 = vand.u32 3, %v527_v35  ;;  %vm425_vm6 = vcmp.lt.s32.totalorder %v424_v32, 2 }
 0x21f   :  { %v405_v61 = vor.u32 %v404_v58, %v403_v57  ;;  %v408_v63 = vshll.u32 %v407_v59, 23  ;;  %v502_v0 = vclz %v592_v60 }
 0x220   :  { %vm533_vm7 = vcmp.eq.s32.totalorder %v528_v37, 2  ;;  %vm530_vm9 = vcmp.eq.s32.totalorder %v528_v37, 0  ;;  %vm529_vm10 = vcmp.lt.s32.totalorder %v528_v37, 2 }
 0x221   :  { %v409_v1 = vor.u32 4788187, %v408_v63  ;;  %v593_v2 = vadd.s32 4294967294, %v502_v0  ;;  %v412_v6 = vcvt.s32.f32 %v405_v61 }
 0x223   :  { %v410_v4 = vand.u32 2147483647, %v409_v1  ;;  %vm594_vm15 = vcmp.lt.s32.totalorder %v593_v2, 0 }
 0x224   :  { %v505_v8 = vsel %vm594_vm15, 0, %v593_v2 }
 0x225   :  { %v413_v7 = vmul.f32 %v412_v6, %v410_v4  ;;  %v506_v46 = vsub.s32 32, %v505_v8  ;;  %v510_v48 = vsub.s32 4294967266, %v505_v8  ;;  %v507_v12 = vshll.u32 %v498_v49, %v505_v8 }
 0x227   :  { %v414_v3 = vxor.u32 2147483648, %v413_v7  ;;  %v508_v9 = vshrl.u32 %v490_v10, %v506_v46  ;;  %v511_v11 = vadd.s32 127, %v510_v48 }
 0x229   :  { %v415_v14 = vsel %vm332_vm0, %v414_v3, %v413_v7  ;;  %v509_v17 = vor.u32 %v508_v9, %v507_v12  ;;  %v512_v18 = vshll.u32 %v511_v11, 23 }
 0x22a   :  { %v418_v16 = vsel %vm920_vm1, %v864_v50, %v415_v14 }
 0x22b   :  { %706 = vcosq.f32 %v418_v16  ;;  %v513_v19 = vor.u32 4788187, %v512_v18  ;;  %v516_v21 = vcvt.s32.f32 %v509_v17 }
 0x22c   :  { %708 = vsinq.f32 %v418_v16 }
 0x22d   :  { %v514_v20 = vand.u32 2147483647, %v513_v19 }
 0x22f   :  { %v517_v51 = vmul.f32 %v516_v21, %v514_v20 }
 0x231   :  { %v518_v23 = vxor.u32 2147483648, %v517_v51 }
 0x233   :  { %v519_v26 = vsel %vm436_vm2, %v518_v23, %v517_v51 }
 0x234   :  { %v522_v27 = vsel %vm435_vm3, %v870_v56, %v519_v26 }
 0x235   :  { %710 = vcosq.f32 %v522_v27 }
 0x236   :  { %712 = vsinq.f32 %v522_v27 }
 0x238   :  { %v707_v5 = vpop.eup %706 }
 0x239   :  { %v709_v31 = vpop.eup %708  ;;  %v430_v34 = vxor.u32 2147483648, %v707_v5 }
 0x23a   :  { %v427_v33 = vxor.u32 2147483648, %v709_v31 }
 0x23b   :  { %v431_v36 = vsel %vm429_vm5, %v430_v34, %v709_v31 }
 0x23c   :  { %v428_v62 = vsel %vm426_vm4, %v707_v5, %v427_v33 }
 0x23d   :  { %v432_v40 = vsel %vm425_vm6, %v428_v62, %v431_v36 }
 0x23e   :  { %v433_v44 = vsel %vm422_vm8, nan, %v432_v40 }
 0x23f   :  { %v538_v54 = vmul.f32 %v433_v44, %v860_v45 }
 0x242   :  { %v711_v38 = vpop.eup %710 }
 0x243   :  { %v713_v39 = vpop.eup %712  ;;  %v534_v42 = vxor.u32 2147483648, %v711_v38 }
 0x244   :  { %v531_v41 = vxor.u32 2147483648, %v713_v39 }
 0x245   :  { %v535_v43 = vsel %vm533_vm7, %v534_v42, %v713_v39 }
 0x246   :  { %v532_v49 = vsel %vm530_vm9, %v711_v38, %v531_v41 }
 0x247   :  { %v536_v52 = vsel %vm529_vm10, %v532_v49, %v535_v43 }
 0x248   :  { %v537_v53 = vsel %vm526_vm11, nan, %v536_v52 }
 0x249   :  { %v539_v55 = vmul.f32 %v537_v53, %v862_v47 }
 0x24b   :  { %v602_v57 = vpack.c.bf16 %v539_v55, %v538_v54 }
 0x24d   :  { %603 = vst [vmem:[#allocation7] sm:$0xff] %v602_v57  }
 0x24e   :  { %765 = shalt.err (!%p762_p0)
}
 0x24f   :  { %561 = dma.vmem_to_hbm [thread:$0]  %s556_s5, 128, %s955_s6, [#allocation4], %s781_s24, %s781_s24, %s782_s25  }
 0x250   :  { %778 = dma.done.wait [#allocation4], 128  }
 0x251   :  { %779 = vsyncadd [#allocation4], 4294967168 }
 0x252   :  { %565 = vsyncpa [#allocation3], 1 }
 0x253   :  { %566 = vsyncpa [#allocation6], 1 }
 0x254   :  { %567 = vsyncpa [#allocation4], 1 }

</bundles_post_ra>
